<compile_context>
chip_gen: v7x
topology: tpu7x:2x2x1
jax: 0.10.0
libtpu: 0.0.40
codegen_flags: <defaults>
</compile_context>

<pallas_src>
import functools

import jax
import jax.numpy as jnp
from jax.experimental import pallas as pl
from jax.experimental.pallas import tpu as pltpu


def _z_to_index_kernel(x_ref, o_ref, colmin_ref, *, allowed):
    """Elementwise species lookup over one (tile_rows, 128) int32 tile.

    x_ref      : VMEM int32[tile_rows, 128]  atomic numbers (padded with a valid Z)
    o_ref      : VMEM int32[tile_rows, 128]  atomic indices (-1 for unknown Z)
    colmin_ref : VMEM int32[1, 128]          per-block column-min of the output
                                             (min < 0  <=>  some invalid Z in block)
    allowed    : tuple of Python ints (static, baked into the trace)
    """
    x = x_ref[...]
    out = jnp.full_like(x, -1)
    # One vcmp + vsel per allowed species, with immediate/splat constants.
    for idx, z in enumerate(allowed):
        out = jnp.where(x == jnp.int32(z), jnp.int32(idx), out)
    o_ref[...] = out
    # Sublane reduction only (lane-wise min); host finishes the tiny reduce.
    colmin_ref[...] = jnp.min(out, axis=0, keepdims=True)


class AtomicNumberToIndex:
    """JAX/Pallas port of eigenn.nn.embedding._AtomicNumberToIndex."""

    _LANES = 128
    _MAX_TILE_ROWS = 512  # (512, 128) int32 tile = 256 KiB per buffer

    def __init__(self, allowed_atomic_numbers):
        allowed = tuple(sorted(int(z) for z in allowed_atomic_numbers))
        self._allowed = allowed
        self.min_Z = allowed[0]
        self.max_Z = allowed[-1]
        self.num_species = len(allowed)

        # Dense table kept only for reference checks / introspection (the
        # kernel itself uses the baked-in `allowed` constants).
        table_len = 1 + self.max_Z - self.min_Z
        table = jnp.full((table_len,), -1, dtype=jnp.int32)
        table = table.at[jnp.asarray(allowed, jnp.int32) - self.min_Z].set(
            jnp.arange(self.num_species, dtype=jnp.int32)
        )
        self._table = table

        self._kernel = functools.partial(_z_to_index_kernel, allowed=allowed)

    def __call__(self, atomic_numbers: jax.Array, *, validate: bool = True) -> jax.Array:
        assert atomic_numbers.ndim == 1
        n = atomic_numbers.shape[0]
        az = atomic_numbers.astype(jnp.int32)

        if n == 0:
            # torch's .min() on an empty tensor errors; we just return empty.
            return jnp.zeros((0,), dtype=jnp.int32)

        lanes = self._LANES
        rows = pl.cdiv(n, lanes)
        rows_pad8 = ((rows + 7) // 8) * 8                 # (8,128)-aligned tiles
        tile_rows = min(self._MAX_TILE_ROWS, rows_pad8)
        grid = pl.cdiv(rows_pad8, tile_rows)
        rows_total = grid * tile_rows
        padded = rows_total * lanes

        # Pad with a *valid* atomic number (min_Z) so padded slots never flag
        # as invalid; padded outputs are sliced off below.
        az_pad = jnp.pad(az, (0, padded - n), constant_values=self.min_Z)
        x2d = az_pad.reshape(rows_total, lanes)

        out2d, colmin = pl.pallas_call(
            self._kernel,
            out_shape=(
                jax.ShapeDtypeStruct((rows_total, lanes), jnp.int32),
                jax.ShapeDtypeStruct((grid, lanes), jnp.int32),
            ),
            grid=(grid,),
            in_specs=[pl.BlockSpec((tile_rows, lanes), lambda i: (i, 0))],
            out_specs=(
                pl.BlockSpec((tile_rows, lanes), lambda i: (i, 0)),
                pl.BlockSpec((1, lanes), lambda i: (i, 0)),
            ),
            compiler_params=pltpu.CompilerParams(
                dimension_semantics=("parallel",),
            ),
        )(x2d)

        index = out2d.reshape(padded)[:n]

        if validate:
            # Single blocking readback on the tiny per-block summary.
            if int(jnp.min(colmin)) < 0:
                # Slow diagnostic path (only on error): pick the right message.
                az_min = int(jnp.min(az))
                az_max = int(jnp.max(az))
                if az_min < self.min_Z or az_max > self.max_Z:
                    raise RuntimeError(
                        f"Invalid atomic numbers. Expect atomic numbers to be in the "
                        f"range [{self.min_Z}, {self.max_Z}], but got min {az_min} "
                        f"and max {az_max}"
                    )
                # TODO(synk): original module reports the first offending atom
                # index/value; we raise a generic message to avoid per-element
                # host readbacks.
                raise RuntimeError(
                    f"Expect atomic numbers to be in {list(self._allowed)}, got "
                    f"atomic number(s) not in the allowed set."
                )
        return index


if __name__ == "__main__":
    # Allowed species: H, C, N, O, S  ->  indices 0..4
    mapper = AtomicNumberToIndex([1, 6, 7, 8, 16])

    key = jax.random.PRNGKey(0)
    allowed = jnp.asarray([1, 6, 7, 8, 16], dtype=jnp.int32)
    # 8 atoms drawn deterministically from the allowed set.
    choice = jax.random.randint(key, (8,), 0, allowed.shape[0])
    atomic_numbers = allowed[choice]

    index = mapper(atomic_numbers)
    index = jax.block_until_ready(index)

    # Reference check in plain JAX (dense-table gather).
    ref = mapper._table[atomic_numbers - mapper.min_Z]
    assert index.shape == atomic_numbers.shape
    assert index.dtype == jnp.int32
    assert bool(jnp.all(index == ref))

    # Also exercise a larger, multi-tile input.
    key2 = jax.random.PRNGKey(1)
    choice2 = jax.random.randint(key2, (3000,), 0, allowed.shape[0])
    az2 = allowed[choice2]
    idx2 = jax.block_until_ready(mapper(az2))
    ref2 = mapper._table[az2 - mapper.min_Z]
    assert bool(jnp.all(idx2 == ref2))

    print("KERNEL_OK")
</pallas_src>

<mosaic_0001>
module attributes {stable_mosaic.version = 11 : i64} {
  func.func @_z_to_index_kernel(%arg0: i32, %arg1: memref<8x128xi32, #tpu.memory_space<vmem>>, %arg2: memref<8x128xi32, #tpu.memory_space<vmem>>, %arg3: memref<1x128xi32, #tpu.memory_space<vmem>>) attributes {dimension_semantics = [#tpu.dimension_semantics<parallel>], iteration_bounds = array<i64: 1>, scalar_prefetch = 0 : i64, scratch_operands = 0 : i64, tpu.core_type = #tpu.core_type<tc>, window_params = [{transform_indices = @transform_0, window_bounds = array<i64: 8, 128>}, {transform_indices = @transform_1, window_bounds = array<i64: 8, 128>}, {transform_indices = @transform_2, window_bounds = array<i64: 1, 128>}]} {
    %c0 = arith.constant 0 : index
    %c0_0 = arith.constant 0 : index
    %0 = vector.load %arg1[%c0, %c0_0] : memref<8x128xi32, #tpu.memory_space<vmem>>, vector<8x128xi32>
    %c-1_i32 = arith.constant -1 : i32
    %1 = vector.broadcast %c-1_i32 : i32 to vector<8x128xi32>
    %c1_i32 = arith.constant 1 : i32
    %2 = vector.broadcast %c1_i32 : i32 to vector<8x128xi32>
    %3 = arith.cmpi eq, %0, %2 : vector<8x128xi32>
    %c0_i32 = arith.constant 0 : i32
    %4 = vector.broadcast %c0_i32 : i32 to vector<8x128xi32>
    %5 = arith.select %3, %4, %1 : vector<8x128xi1>, vector<8x128xi32>
    %c6_i32 = arith.constant 6 : i32
    %6 = vector.broadcast %c6_i32 : i32 to vector<8x128xi32>
    %7 = arith.cmpi eq, %0, %6 : vector<8x128xi32>
    %c1_i32_1 = arith.constant 1 : i32
    %8 = vector.broadcast %c1_i32_1 : i32 to vector<8x128xi32>
    %9 = arith.select %7, %8, %5 : vector<8x128xi1>, vector<8x128xi32>
    %c7_i32 = arith.constant 7 : i32
    %10 = vector.broadcast %c7_i32 : i32 to vector<8x128xi32>
    %11 = arith.cmpi eq, %0, %10 : vector<8x128xi32>
    %c2_i32 = arith.constant 2 : i32
    %12 = vector.broadcast %c2_i32 : i32 to vector<8x128xi32>
    %13 = arith.select %11, %12, %9 : vector<8x128xi1>, vector<8x128xi32>
    %c8_i32 = arith.constant 8 : i32
    %14 = vector.broadcast %c8_i32 : i32 to vector<8x128xi32>
    %15 = arith.cmpi eq, %0, %14 : vector<8x128xi32>
    %c3_i32 = arith.constant 3 : i32
    %16 = vector.broadcast %c3_i32 : i32 to vector<8x128xi32>
    %17 = arith.select %15, %16, %13 : vector<8x128xi1>, vector<8x128xi32>
    %c16_i32 = arith.constant 16 : i32
    %18 = vector.broadcast %c16_i32 : i32 to vector<8x128xi32>
    %19 = arith.cmpi eq, %0, %18 : vector<8x128xi32>
    %c4_i32 = arith.constant 4 : i32
    %20 = vector.broadcast %c4_i32 : i32 to vector<8x128xi32>
    %21 = arith.select %19, %20, %17 : vector<8x128xi1>, vector<8x128xi32>
    %c0_2 = arith.constant 0 : index
    %c0_3 = arith.constant 0 : index
    %22 = vector.load %arg2[%c0_2, %c0_3] : memref<8x128xi32, #tpu.memory_space<vmem>>, vector<8x128xi32>
    tpu.vector_store %arg2[%c0_2, %c0_3], %21 {strides = array<i32>} : memref<8x128xi32, #tpu.memory_space<vmem>>, vector<8x128xi32>,
    %cst = arith.constant dense<2147483647> : vector<128xi32>
    %23 = vector.multi_reduction <minsi>, %21, %cst [0] : vector<8x128xi32> to vector<128xi32>
    %24 = vector.shape_cast %23 : vector<128xi32> to vector<1x128xi32>
    %c0_4 = arith.constant 0 : index
    %c0_5 = arith.constant 0 : index
    %25 = vector.load %arg3[%c0_4, %c0_5] : memref<1x128xi32, #tpu.memory_space<vmem>>, vector<1x128xi32>
    tpu.vector_store %arg3[%c0_4, %c0_5], %24 {strides = array<i32>} : memref<1x128xi32, #tpu.memory_space<vmem>>, vector<1x128xi32>,
    return
  }
  func.func @transform_0(%arg0: i32) -> (i32, i32) {
    %c0_i32 = arith.constant 0 : i32
    %c0_i32_0 = arith.constant 0 : i32
    return %arg0, %c0_i32 : i32, i32
  }
  func.func @transform_1(%arg0: i32) -> (i32, i32) {
    %c0_i32 = arith.constant 0 : i32
    %c0_i32_0 = arith.constant 0 : i32
    return %arg0, %c0_i32 : i32, i32
  }
  func.func @transform_2(%arg0: i32) -> (i32, i32) {
    %c0_i32 = arith.constant 0 : i32
    %c0_i32_0 = arith.constant 0 : i32
    return %arg0, %c0_i32 : i32, i32
  }
}

</mosaic_0001>

<bundles_post_ra>
// kernel: tpu_custom_call.1
= control target key start
LH: loop header
LB: loop body
LE: loop exit
PB: predicated region body
PF: predicated region fallthrough
CT: control target
= control target key end

     0   :  { %8 = vsyncpa [#allocation3], 0  ;;  %s206_s0 = inlined_call_operand.hbm [shape: s32[8,128], index: 0, kind: input, shape index: {}]   ;;  %s207_s1 = inlined_call_operand.hbm [shape: s32[8,128], index: 1, kind: output, shape index: {0}]   ;;  %s208_s2 = inlined_call_operand.hbm [shape: s32[1,128], index: 2, kind: output, shape index: {1}]  }
   0x1   :  { %9 = vsyncpa [#allocation4], 0 }
   0x2   :  { %10 = vsyncpa [#allocation7], 0  ;;  %s151_s9 = smov [#allocation2]   ;;  %s79_s13 = scalar_lea.hbm %s206_s0, 128 }
   0x3   :  { %s17_s10 = sshll.u32 %s151_s9, 4  ;;  %p80_p0 = scmp.ne.s32.totalorder %s206_s0, %s79_s13  ;;  %s18_s10 = int_to_ptr.vmem [resolvable:$true] %s17_s10 }
   0x4   :  { %p83_p1 = scmp.lt.u32.totalorder %s79_s13, %s206_s0 }
   0x6   :  { %p85_p2 = pnand %p83_p1, %p80_p0 }
   0x8   :  { %88 = shalt.err (!%p85_p2)
}
   0x9   :  { %s89_s18 = scalar_lea.vmem %s18_s10, 128  ;;  %p94_p4 = scmp.lt.s32.totalorder %s18_s10, %s18_s10 }
   0xa   :  { %p90_p3 = scmp.ne.s32.totalorder %s18_s10, %s89_s18  ;;  %p95_p5 = scmp.lt.s32.totalorder %s89_s18, %s89_s18 }
   0xc   :  { %p96_p6 = por %p95_p5, %p94_p4 }
   0xe   :  { %p97_p7 = pnand %p96_p6, %p90_p3 }
  0x10   :  { %100 = shalt.err (!%p97_p7)
}
  0x11   :  { %20 = dma.hbm_to_vmem [thread:$0]  %s206_s0, 128, %s18_s10, [#allocation3]  }
  0x12   :  { %145 = dma.done.wait [#allocation3], 128  }
  0x13   :  { %146 = vsyncadd [#allocation3], 4294967168  ;;  %v24_v0 = vld [vmem:[#allocation2] sm:$0xff]  ;;  %v152_v1 = vmov 4294967295   ;;  %s153_s21 = smov [#allocation5]  }
  0x14   :  { %vm25_vm0 = vcmp.eq.s32.totalorder %v24_v0, 1  ;;  %vm27_vm1 = vcmp.eq.s32.totalorder %v24_v0, 6  ;;  %vm29_vm2 = vcmp.eq.s32.totalorder %v24_v0, 7  ;;  %vm31_vm3 = vcmp.eq.s32.totalorder %v24_v0, 8  ;;  %s52_s22 = sshll.u32 %s153_s21, 4  ;;  %s53_s22 = int_to_ptr.vmem [resolvable:$true] %s52_s22 }
  0x15   :  { %v26_v2 = vsel %vm25_vm0, 0, %v152_v1  ;;  %vm33_vm4 = vcmp.eq.s32.totalorder %v24_v0, 16  ;;  %s101_s0 = scalar_lea.vmem %s53_s22, 128  ;;  %p106_p9 = scmp.lt.s32.totalorder %s53_s22, %s53_s22 }
  0x16   :  { %v28_v3 = vsel %vm27_vm1, 1, %v26_v2  ;;  %p102_p8 = scmp.ne.s32.totalorder %s53_s22, %s101_s0  ;;  %p107_p10 = scmp.lt.s32.totalorder %s101_s0, %s101_s0 }
  0x17   :  { %v30_v4 = vsel %vm29_vm2, 2, %v28_v3 }
  0x18   :  { %v32_v5 = vsel %vm31_vm3, 3, %v30_v4  ;;  %p108_p11 = por %p107_p10, %p106_p9 }
  0x19   :  { %v34_v6 = vsel %vm33_vm4, 4, %v32_v5 }
  0x1a   :  { %35 = vst [vmem:[#allocation5] sm:$0xff] %v34_v6  ;;  %v36_v7 = vrot.slane %v34_v6, 4  ;;  %p109_p12 = pnand %p108_p11, %p102_p8 }
  0x1c   :  { %112 = shalt.err (!%p109_p12)
}
  0x1d   :  { %s113_s25 = scalar_lea.hbm %s207_s1, 128 }
  0x1e   :  { %p114_p13 = scmp.ne.s32.totalorder %s207_s1, %s113_s25  ;;  %p117_p0 = scmp.lt.u32.totalorder %s113_s25, %s207_s1 }
  0x20   :  { %p119_p1 = pnand %p117_p0, %p114_p13 }
  0x22   :  { %122 = shalt.err (!%p119_p1)
}
  0x23   :  { %55 = dma.vmem_to_hbm [thread:$0]  %s53_s22, 128, %s207_s1, [#allocation4]   ;;  %vm37_vm5 = vcmp.lt.s32.totalorder %v34_v6, %v36_v7 }
  0x24   :  { %v38_v8 = vsel %vm37_vm5, %v34_v6, %v36_v7  ;;  %s154_s4 = smov [#allocation6]  }
  0x25   :  { %v39_v9 = vrot.slane %v38_v8, 2  ;;  %s62_s5 = sshll.u32 %s154_s4, 4  ;;  %s63_s5 = int_to_ptr.vmem [resolvable:$true] %s62_s5 }
  0x26   :  { %s123_s6 = scalar_lea.vmem %s63_s5, 16  ;;  %s127_s7 = scalar_lea.vmem %s63_s5, 32 }
  0x27   :  { %vm40_vm6 = vcmp.lt.s32.totalorder %v38_v8, %v39_v9  ;;  %p124_p2 = scmp.ne.s32.totalorder %s63_s5, %s123_s6  ;;  %p128_p3 = scmp.lt.s32.totalorder %s63_s5, %s63_s5 }
  0x28   :  { %v41_v10 = vsel %vm40_vm6, %v38_v8, %v39_v9  ;;  %p129_p4 = scmp.lt.s32.totalorder %s127_s7, %s123_s6 }
  0x29   :  { %v42_v11 = vrot.slane %v41_v10, 1 }
  0x2a   :  { %p130_p5 = por %p129_p4, %p128_p3 }
  0x2b   :  { %vm43_vm7 = vcmp.lt.s32.totalorder %v41_v10, %v42_v11 }
  0x2c   :  { %v44_v12 = vsel %vm43_vm7, %v41_v10, %v42_v11  ;;  %p131_p6 = pnand %p130_p5, %p124_p2 }
  0x2d   :  { %45 = vst [vmem:[#allocation6] sm:$0x1] %v44_v12 }
  0x2e   :  { %134 = shalt.err (!%p131_p6)
}
  0x2f   :  { %s135_s9 = scalar_lea.hbm %s208_s2, 16 }
  0x30   :  { %p136_p7 = scmp.ne.s32.totalorder %s208_s2, %s135_s9  ;;  %p139_p8 = scmp.lt.u32.totalorder %s135_s9, %s208_s2 }
  0x32   :  { %p141_p9 = pnand %p139_p8, %p136_p7 }
  0x34   :  { %144 = shalt.err (!%p141_p9)
}
  0x35   :  { %65 = dma.vmem_to_hbm [thread:$0]  %s63_s5, 16, %s208_s2, [#allocation7]  }
  0x36   :  { %147 = dma.done.wait [#allocation4], 128  }
  0x37   :  { %148 = vsyncadd [#allocation4], 4294967168 }
  0x38   :  { %149 = dma.done.wait [#allocation7], 16  }
  0x39   :  { %150 = vsyncadd [#allocation7], 4294967280 }
  0x3a   :  { %72 = vsyncpa [#allocation3], 1 }
  0x3b   :  { %73 = vsyncpa [#allocation4], 1 }
  0x3c   :  { %74 = vsyncpa [#allocation7], 1 }

</bundles_post_ra>
